<compile_context>
chip_gen: v7x
topology: tpu7x:2x2x1
jax: 0.10.0
libtpu: 0.0.40
codegen_flags: <defaults>
</compile_context>

<pallas_src>
import functools
import math

import jax
import jax.numpy as jnp
from jax import lax
from jax.experimental import pallas as pl
from jax.experimental.pallas import tpu as pltpu

K = 3  # kernel_size (default module config)


def _gated_convtranspose_kernel(x_ref, w_ref, b_ref, out_ref, xpf_ref,
                                patch_ref, *, W, guard):
    # x_ref    : (1, Cin, n)        flattened row-major NCHW image, n = H*W
    # w_ref    : (3*Cout, K*K*Cin)  packed [feat | gate | identity-residual]
    # b_ref    : (3*Cout, 1)        packed bias (zero rows for the residual)
    # out_ref  : (1, Cout, n)       flattened NCHW output (lane-dense)
    # xpf_ref  : (Cin, n + 2*guard) zero-guarded flat image (VMEM scratch)
    # patch_ref: (K*K*Cin, n)       im2col patch matrix (VMEM scratch)
    _, Cin, n = x_ref.shape
    C3 = w_ref.shape[0]
    Cout = C3 // 3

    # Stage the image between zero guards: stencil reads that run off the
    # top/bottom image rows land in the guard and contribute exactly 0 (the
    # SAME halo), so no padded HBM copy is needed.  Re-initialised every step
    # so each megacore core is self-contained.
    xpf_ref[...] = jnp.zeros_like(xpf_ref)
    xpf_ref[:, guard:guard + n] = x_ref[0]

    # Lane masks for the left/right image borders: a tap reading w-1 (w+1) is
    # invalid in the first (last) column; in the flattened layout those reads
    # wrap into the neighbouring row and must be zeroed explicitly.
    col = lax.broadcasted_iota(jnp.int32, (Cin, n), 1) % W
    mask_l = col >= 1          # tap reads w-1
    mask_r = col <= W - 2      # tap reads w+1

    # im2col: each tap (dh, dw) of the 3x3 stencil is the flat image shifted
    # by dh*W + dw lanes -> 9 static slice reads, no per-tap reshape/relayout.
    for dh in (-1, 0, 1):
        for dw in (-1, 0, 1):
            t = (dh + 1) * K + (dw + 1)
            start = guard + dh * W + dw
            tap = xpf_ref[:, start:start + n]
            if dw == -1:
                tap = jnp.where(mask_l, tap, 0.0)
            elif dw == 1:
                tap = jnp.where(mask_r, tap, 0.0)
            patch_ref[t * Cin:(t + 1) * Cin, :] = tap

    # One fused MXU matmul for features | gate | residual, with the bias
    # folded into the accumulator init.  The residual lives in the identity
    # rows of the centre tap, so it costs no extra DMA and no extra ops.
    acc = b_ref[...] + jnp.dot(w_ref[...], patch_ref[...],
                               preferred_element_type=jnp.float32)

    feat = acc[:Cout]
    gate = acc[Cout:2 * Cout]
    res = acc[2 * Cout:]

    # activation=None -> identity on features; sigmoid gate; residual add
    # (stride==1 and Cin==Cout -> upsample is None, residual is the identity).
    out = feat * jax.nn.sigmoid(gate) + res           # (Cout, n), f32
    out_ref[...] = out.reshape(out_ref.shape).astype(out_ref.dtype)


def gated_conv_transpose2d(x_nchw, wf, wg, bf, bg):
    """x_nchw: (B, Cin, H, W); wf, wg: (Cin, Cout, K, K) PyTorch layout."""
    B, Cin, H, W = x_nchw.shape
    Cout = wf.shape[1]
    assert Cin == Cout, "identity-residual path requires Cin == Cout"
    n = H * W
    guard = ((W + 1 + 127) // 128) * 128     # lane-aligned zero guard >= W+1

    # Free, layout-preserving view: spatial goes on the lane axis, Cin stays on
    # sublanes.  No transpose / pad / im2col HBM round trip in the wrapper.
    x_flat = x_nchw.reshape(B, Cin, n).astype(jnp.float32)

    # Effective (pre-flipped, transposed) per-tap weights packed into a single
    # (3*Cout, K*K*Cin) matrix: row blocks [feat | gate | identity-residual],
    # contraction index t*Cin + c with tap t = (dh+1)*K + (dw+1).
    wfT = jnp.transpose(wf[:, :, ::-1, ::-1], (2, 3, 1, 0)).reshape(K * K, Cout, Cin)
    wgT = jnp.transpose(wg[:, :, ::-1, ::-1], (2, 3, 1, 0)).reshape(K * K, Cout, Cin)
    eyeT = jnp.zeros((K * K, Cout, Cin), jnp.float32).at[(K * K) // 2].set(
        jnp.eye(Cout, Cin, dtype=jnp.float32))             # residual = centre tap
    w_comb = jnp.concatenate([wfT, wgT, eyeT], axis=1)     # (K*K, 3*Cout, Cin)
    w_big = jnp.transpose(w_comb, (1, 0, 2)).reshape(
        3 * Cout, K * K * Cin).astype(jnp.float32)
    b_big = jnp.concatenate(
        [bf, bg, jnp.zeros((Cout,), bf.dtype)]).reshape(3 * Cout, 1).astype(jnp.float32)

    kernel = functools.partial(_gated_convtranspose_kernel, W=W, guard=guard)

    out_flat = pl.pallas_call(
        kernel,
        out_shape=jax.ShapeDtypeStruct((B, Cout, n), x_nchw.dtype),
        grid=(B,),                                   # one step per batch element
        in_specs=[
            pl.BlockSpec((1, Cin, n), lambda b: (b, 0, 0)),
            pl.BlockSpec((3 * Cout, K * K * Cin), lambda b: (0, 0)),
            pl.BlockSpec((3 * Cout, 1), lambda b: (0, 0)),
        ],
        out_specs=pl.BlockSpec((1, Cout, n), lambda b: (b, 0, 0)),
        scratch_shapes=[
            pltpu.VMEM((Cin, n + 2 * guard), jnp.float32),   # zero-guarded image
            pltpu.VMEM((K * K * Cin, n), jnp.float32),       # im2col patches
        ],
        compiler_params=pltpu.CompilerParams(
            dimension_semantics=("parallel",)),      # megacore shards over batch
    )(x_flat, w_big, b_big)

    return out_flat.reshape(B, Cout, H, W)           # already NCHW-ordered


def ref_conv_transpose(x, w, b, padding=1):
    """Direct scatter definition of nn.ConvTranspose2d (stride=1)."""
    B, Cin, H, W = x.shape
    Cout = w.shape[1]
    Hf, Wf = H + K - 1, W + K - 1
    y = jnp.zeros((B, Cout, Hf, Wf), jnp.float32)
    for kh in range(K):
        for kw in range(K):
            y = y.at[:, :, kh:kh + H, kw:kw + W].add(
                jnp.einsum('bchw,cd->bdhw', x, w[:, :, kh, kw]))
    y = y[:, :, padding:Hf - padding, padding:Wf - padding]
    return y + b[None, :, None, None]


if __name__ == "__main__":
    B, Cin, Cout, H, W = 2, 4, 4, 16, 16

    key = jax.random.PRNGKey(0)
    kx, k1, k2, k3, k4 = jax.random.split(key, 5)
    stdv = 1.0 / math.sqrt(Cin * K * K)

    x = jax.random.normal(kx, (B, Cin, H, W), jnp.float32)
    wf = jax.random.uniform(k1, (Cin, Cout, K, K), jnp.float32, -stdv, stdv)
    wg = jax.random.uniform(k2, (Cin, Cout, K, K), jnp.float32, -stdv, stdv)
    bf = jax.random.uniform(k3, (Cout,), jnp.float32, -stdv, stdv)
    bg = jax.random.uniform(k4, (Cout,), jnp.float32, -stdv, stdv)

    out = jax.jit(gated_conv_transpose2d)(x, wf, wg, bf, bg)
    out = jax.block_until_ready(out)

    # Pure-JAX reference of the full forward (activation=None, residual=True)
    feat = ref_conv_transpose(x, wf, bf)
    gate = ref_conv_transpose(x, wg, bg)
    ref = feat * jax.nn.sigmoid(gate) + x

    assert out.shape == (B, Cout, H, W)
    err = float(jnp.max(jnp.abs(out - ref)))
    assert jnp.allclose(out, ref, atol=1e-5, rtol=1e-5), f"max abs err {err}"
    print("KERNEL_OK")
</pallas_src>

<mosaic_0001>
module attributes {stable_mosaic.version = 11 : i64} {
  func.func @_gated_convtranspose_kernel(%arg0: i32, %arg1: memref<1x4x256xf32, #tpu.memory_space<vmem>>, %arg2: memref<12x36xf32, #tpu.memory_space<vmem>>, %arg3: memref<12x1xf32, #tpu.memory_space<vmem>>, %arg4: memref<1x4x256xf32, #tpu.memory_space<vmem>>, %arg5: memref<4x512xf32, #tpu.memory_space<vmem>>, %arg6: memref<36x256xf32, #tpu.memory_space<vmem>>) attributes {dimension_semantics = [#tpu.dimension_semantics<parallel>], iteration_bounds = array<i64: 2>, scalar_prefetch = 0 : i64, scratch_operands = 2 : i64, tpu.core_type = #tpu.core_type<tc>, window_params = [{transform_indices = @transform_0, window_bounds = array<i64: 1, 4, 256>}, {pipeline_mode = #tpu.pipeline_mode<synchronous>, transform_indices = @transform_1, window_bounds = array<i64: 12, 36>}, {pipeline_mode = #tpu.pipeline_mode<synchronous>, transform_indices = @transform_2, window_bounds = array<i64: 12, 1>}, {transform_indices = @transform_3, window_bounds = array<i64: 1, 4, 256>}]} {
    %cst = arith.constant 0.000000e+00 : f32
    %0 = vector.broadcast %cst : f32 to vector<4x512xf32>
    %c0 = arith.constant 0 : index
    %c0_0 = arith.constant 0 : index
    %1 = vector.load %arg5[%c0, %c0_0] : memref<4x512xf32, #tpu.memory_space<vmem>>, vector<4x512xf32>
    tpu.vector_store %arg5[%c0, %c0_0], %0 {strides = array<i32>} : memref<4x512xf32, #tpu.memory_space<vmem>>, vector<4x512xf32>,
    %c0_1 = arith.constant 0 : index
    %c0_2 = arith.constant 0 : index
    %c0_3 = arith.constant 0 : index
    %2 = vector.load %arg1[%c0_1, %c0_2, %c0_3] : memref<1x4x256xf32, #tpu.memory_space<vmem>>, vector<1x4x256xf32>
    %3 = vector.shape_cast %2 : vector<1x4x256xf32> to vector<4x256xf32>
    %c0_4 = arith.constant 0 : index
    %c128 = arith.constant 128 : index
    %4 = vector.load %arg5[%c0_4, %c128] : memref<4x512xf32, #tpu.memory_space<vmem>>, vector<4x256xf32>
    tpu.vector_store %arg5[%c0_4, %c128], %3 {strides = array<i32>} : memref<4x512xf32, #tpu.memory_space<vmem>>, vector<4x256xf32>,
    %5 = tpu.iota {dimensions = array<i32: 1>} : vector<4x256xi32>
    %c16_i32 = arith.constant 16 : i32
    %c0_i32 = arith.constant 0 : i32
    %6 = arith.cmpi eq, %c16_i32, %c0_i32 : i32
    %c1_i32 = arith.constant 1 : i32
    %7 = arith.select %6, %c1_i32, %c16_i32 : i32
    %8 = vector.broadcast %7 : i32 to vector<4x256xi32>
    %9 = arith.remsi %5, %8 : vector<4x256xi32>
    %c0_i32_5 = arith.constant 0 : i32
    %10 = vector.broadcast %c0_i32_5 : i32 to vector<4x256xi32>
    %11 = arith.cmpi ne, %9, %10 : vector<4x256xi32>
    %c0_i32_6 = arith.constant 0 : i32
    %12 = vector.broadcast %c0_i32_6 : i32 to vector<4x256xi32>
    %13 = arith.cmpi slt, %9, %12 : vector<4x256xi32>
    %c0_i32_7 = arith.constant 0 : i32
    %14 = arith.cmpi slt, %7, %c0_i32_7 : i32
    %15 = vector.broadcast %14 : i1 to vector<4x256xi1>
    %16 = vector.broadcast %15 : vector<4x256xi1> to vector<4x256xi1>
    %17 = arith.xori %13, %16 : vector<4x256xi1>
    %18 = arith.andi %17, %11 : vector<4x256xi1>
    %19 = vector.broadcast %7 : i32 to vector<4x256xi32>
    %20 = arith.addi %9, %19 : vector<4x256xi32>
    %21 = arith.select %18, %20, %9 : vector<4x256xi1>, vector<4x256xi32>
    %c1_i32_8 = arith.constant 1 : i32
    %22 = vector.broadcast %c1_i32_8 : i32 to vector<4x256xi32>
    %23 = arith.cmpi sge, %21, %22 : vector<4x256xi32>
    %c14_i32 = arith.constant 14 : i32
    %24 = vector.broadcast %c14_i32 : i32 to vector<4x256xi32>
    %25 = arith.cmpi sle, %21, %24 : vector<4x256xi32>
    %c0_9 = arith.constant 0 : index
    %c111 = arith.constant 111 : index
    %26 = vector.load %arg5[%c0_9, %c111] : memref<4x512xf32, #tpu.memory_space<vmem>>, vector<4x256xf32>
    %cst_10 = arith.constant 0.000000e+00 : f32
    %27 = vector.broadcast %cst_10 : f32 to vector<4x256xf32>
    %28 = arith.select %23, %26, %27 : vector<4x256xi1>, vector<4x256xf32>
    %c0_11 = arith.constant 0 : index
    %c0_12 = arith.constant 0 : index
    %29 = vector.load %arg6[%c0_11, %c0_12] : memref<36x256xf32, #tpu.memory_space<vmem>>, vector<4x256xf32>
    tpu.vector_store %arg6[%c0_11, %c0_12], %28 {strides = array<i32>} : memref<36x256xf32, #tpu.memory_space<vmem>>, vector<4x256xf32>,
    %c0_13 = arith.constant 0 : index
    %c112 = arith.constant 112 : index
    %30 = vector.load %arg5[%c0_13, %c112] : memref<4x512xf32, #tpu.memory_space<vmem>>, vector<4x256xf32>
    %c4 = arith.constant 4 : index
    %c0_14 = arith.constant 0 : index
    %31 = vector.load %arg6[%c4, %c0_14] : memref<36x256xf32, #tpu.memory_space<vmem>>, vector<4x256xf32>
    tpu.vector_store %arg6[%c4, %c0_14], %30 {strides = array<i32>} : memref<36x256xf32, #tpu.memory_space<vmem>>, vector<4x256xf32>,
    %c0_15 = arith.constant 0 : index
    %c113 = arith.constant 113 : index
    %32 = vector.load %arg5[%c0_15, %c113] : memref<4x512xf32, #tpu.memory_space<vmem>>, vector<4x256xf32>
    %cst_16 = arith.constant 0.000000e+00 : f32
    %33 = vector.broadcast %cst_16 : f32 to vector<4x256xf32>
    %34 = arith.select %25, %32, %33 : vector<4x256xi1>, vector<4x256xf32>
    %c8 = arith.constant 8 : index
    %c0_17 = arith.constant 0 : index
    %35 = vector.load %arg6[%c8, %c0_17] : memref<36x256xf32, #tpu.memory_space<vmem>>, vector<4x256xf32>
    tpu.vector_store %arg6[%c8, %c0_17], %34 {strides = array<i32>} : memref<36x256xf32, #tpu.memory_space<vmem>>, vector<4x256xf32>,
    %c0_18 = arith.constant 0 : index
    %c127 = arith.constant 127 : index
    %36 = vector.load %arg5[%c0_18, %c127] : memref<4x512xf32, #tpu.memory_space<vmem>>, vector<4x256xf32>
    %cst_19 = arith.constant 0.000000e+00 : f32
    %37 = vector.broadcast %cst_19 : f32 to vector<4x256xf32>
    %38 = arith.select %23, %36, %37 : vector<4x256xi1>, vector<4x256xf32>
    %c12 = arith.constant 12 : index
    %c0_20 = arith.constant 0 : index
    %39 = vector.load %arg6[%c12, %c0_20] : memref<36x256xf32, #tpu.memory_space<vmem>>, vector<4x256xf32>
    tpu.vector_store %arg6[%c12, %c0_20], %38 {strides = array<i32>} : memref<36x256xf32, #tpu.memory_space<vmem>>, vector<4x256xf32>,
    %c0_21 = arith.constant 0 : index
    %c128_22 = arith.constant 128 : index
    %40 = vector.load %arg5[%c0_21, %c128_22] : memref<4x512xf32, #tpu.memory_space<vmem>>, vector<4x256xf32>
    %c16 = arith.constant 16 : index
    %c0_23 = arith.constant 0 : index
    %41 = vector.load %arg6[%c16, %c0_23] : memref<36x256xf32, #tpu.memory_space<vmem>>, vector<4x256xf32>
    tpu.vector_store %arg6[%c16, %c0_23], %40 {strides = array<i32>} : memref<36x256xf32, #tpu.memory_space<vmem>>, vector<4x256xf32>,
    %c0_24 = arith.constant 0 : index
    %c129 = arith.constant 129 : index
    %42 = vector.load %arg5[%c0_24, %c129] : memref<4x512xf32, #tpu.memory_space<vmem>>, vector<4x256xf32>
    %cst_25 = arith.constant 0.000000e+00 : f32
    %43 = vector.broadcast %cst_25 : f32 to vector<4x256xf32>
    %44 = arith.select %25, %42, %43 : vector<4x256xi1>, vector<4x256xf32>
    %c20 = arith.constant 20 : index
    %c0_26 = arith.constant 0 : index
    %45 = vector.load %arg6[%c20, %c0_26] : memref<36x256xf32, #tpu.memory_space<vmem>>, vector<4x256xf32>
    tpu.vector_store %arg6[%c20, %c0_26], %44 {strides = array<i32>} : memref<36x256xf32, #tpu.memory_space<vmem>>, vector<4x256xf32>,
    %c0_27 = arith.constant 0 : index
    %c143 = arith.constant 143 : index
    %46 = vector.load %arg5[%c0_27, %c143] : memref<4x512xf32, #tpu.memory_space<vmem>>, vector<4x256xf32>
    %cst_28 = arith.constant 0.000000e+00 : f32
    %47 = vector.broadcast %cst_28 : f32 to vector<4x256xf32>
    %48 = arith.select %23, %46, %47 : vector<4x256xi1>, vector<4x256xf32>
    %c24 = arith.constant 24 : index
    %c0_29 = arith.constant 0 : index
    %49 = vector.load %arg6[%c24, %c0_29] : memref<36x256xf32, #tpu.memory_space<vmem>>, vector<4x256xf32>
    tpu.vector_store %arg6[%c24, %c0_29], %48 {strides = array<i32>} : memref<36x256xf32, #tpu.memory_space<vmem>>, vector<4x256xf32>,
    %c0_30 = arith.constant 0 : index
    %c144 = arith.constant 144 : index
    %50 = vector.load %arg5[%c0_30, %c144] : memref<4x512xf32, #tpu.memory_space<vmem>>, vector<4x256xf32>
    %c28 = arith.constant 28 : index
    %c0_31 = arith.constant 0 : index
    %51 = vector.load %arg6[%c28, %c0_31] : memref<36x256xf32, #tpu.memory_space<vmem>>, vector<4x256xf32>
    tpu.vector_store %arg6[%c28, %c0_31], %50 {strides = array<i32>} : memref<36x256xf32, #tpu.memory_space<vmem>>, vector<4x256xf32>,
    %c0_32 = arith.constant 0 : index
    %c145 = arith.constant 145 : index
    %52 = vector.load %arg5[%c0_32, %c145] : memref<4x512xf32, #tpu.memory_space<vmem>>, vector<4x256xf32>
    %cst_33 = arith.constant 0.000000e+00 : f32
    %53 = vector.broadcast %cst_33 : f32 to vector<4x256xf32>
    %54 = arith.select %25, %52, %53 : vector<4x256xi1>, vector<4x256xf32>
    %c32 = arith.constant 32 : index
    %c0_34 = arith.constant 0 : index
    %55 = vector.load %arg6[%c32, %c0_34] : memref<36x256xf32, #tpu.memory_space<vmem>>, vector<4x256xf32>
    tpu.vector_store %arg6[%c32, %c0_34], %54 {strides = array<i32>} : memref<36x256xf32, #tpu.memory_space<vmem>>, vector<4x256xf32>,
    %c0_35 = arith.constant 0 : index
    %c0_36 = arith.constant 0 : index
    %56 = vector.load %arg3[%c0_35, %c0_36] : memref<12x1xf32, #tpu.memory_space<vmem>>, vector<12x1xf32>
    %c0_37 = arith.constant 0 : index
    %c0_38 = arith.constant 0 : index
    %57 = vector.load %arg2[%c0_37, %c0_38] : memref<12x36xf32, #tpu.memory_space<vmem>>, vector<12x36xf32>
    %c0_39 = arith.constant 0 : index
    %c0_40 = arith.constant 0 : index
    %58 = vector.load %arg6[%c0_39, %c0_40] : memref<36x256xf32, #tpu.memory_space<vmem>>, vector<36x256xf32>
    %cst_41 = arith.constant dense<0.000000e+00> : vector<12x256xf32>
    %59 = tpu.matmul %57, %58, %cst_41 {dimension_numbers = #tpu.dot_dimension_numbers<[1], [0], [0], [1], [0, 0, 1, 1], [], []>} : vector<12x36xf32>, vector<36x256xf32>, vector<12x256xf32> -> vector<12x256xf32>
    %60 = vector.broadcast %56 : vector<12x1xf32> to vector<12x256xf32>
    %61 = arith.addf %60, %59 : vector<12x256xf32>
    %62 = vector.extract_strided_slice %61 {offsets = [0, 0], sizes = [4, 256], strides = [1, 1]} : vector<12x256xf32> to vector<4x256xf32>
    %63 = vector.extract_strided_slice %61 {offsets = [4, 0], sizes = [4, 256], strides = [1, 1]} : vector<12x256xf32> to vector<4x256xf32>
    %64 = vector.extract_strided_slice %61 {offsets = [8, 0], sizes = [4, 256], strides = [1, 1]} : vector<12x256xf32> to vector<4x256xf32>
    %65 = arith.negf %63 : vector<4x256xf32>
    %66 = math.exp %65 : vector<4x256xf32>
    %cst_42 = arith.constant 1.000000e+00 : f32
    %67 = vector.broadcast %cst_42 : f32 to vector<4x256xf32>
    %68 = arith.addf %67, %66 : vector<4x256xf32>
    %69 = arith.divf %67, %68 : vector<4x256xf32>
    %70 = arith.mulf %62, %69 : vector<4x256xf32>
    %71 = arith.addf %70, %64 : vector<4x256xf32>
    %72 = vector.shape_cast %71 : vector<4x256xf32> to vector<1x4x256xf32>
    %c0_43 = arith.constant 0 : index
    %c0_44 = arith.constant 0 : index
    %c0_45 = arith.constant 0 : index
    %73 = vector.load %arg4[%c0_43, %c0_44, %c0_45] : memref<1x4x256xf32, #tpu.memory_space<vmem>>, vector<1x4x256xf32>
    tpu.vector_store %arg4[%c0_43, %c0_44, %c0_45], %72 {strides = array<i32>} : memref<1x4x256xf32, #tpu.memory_space<vmem>>, vector<1x4x256xf32>,
    return
  }
  func.func @transform_0(%arg0: i32) -> (i32, i32, i32) {
    %c0_i32 = arith.constant 0 : i32
    %c0_i32_0 = arith.constant 0 : i32
    %c0_i32_1 = arith.constant 0 : i32
    return %arg0, %c0_i32, %c0_i32_0 : i32, i32, i32
  }
  func.func @transform_1(%arg0: i32) -> (i32, i32) {
    %c0_i32 = arith.constant 0 : i32
    %c0_i32_0 = arith.constant 0 : i32
    %c0_i32_1 = arith.constant 0 : i32
    return %c0_i32, %c0_i32_0 : i32, i32
  }
  func.func @transform_2(%arg0: i32) -> (i32, i32) {
    %c0_i32 = arith.constant 0 : i32
    %c0_i32_0 = arith.constant 0 : i32
    %c0_i32_1 = arith.constant 0 : i32
    return %c0_i32, %c0_i32_0 : i32, i32
  }
  func.func @transform_3(%arg0: i32) -> (i32, i32, i32) {
    %c0_i32 = arith.constant 0 : i32
    %c0_i32_0 = arith.constant 0 : i32
    %c0_i32_1 = arith.constant 0 : i32
    return %arg0, %c0_i32, %c0_i32_0 : i32, i32, i32
  }
}

</mosaic_0001>

<bundles_post_ra>
// kernel: gated_conv_transpose2d.1
= control target key start
LH: loop header
LB: loop body
LE: loop exit
PB: predicated region body
PF: predicated region fallthrough
CT: control target
= control target key end

     0   :  { %s688_s12 = smov 0   ;;  %s768_s0 = inlined_call_operand.vmem [shape: f32[2,4,256], index: 0, kind: input, shape index: {}]   ;;  %s769_s1 = inlined_call_operand.vmem [shape: f32[12,36], index: 1, kind: input, shape index: {}]   ;;  %s770_s2 = inlined_call_operand.vmem [shape: f32[12,1], index: 2, kind: input, shape index: {}]   ;;  %s771_s3 = inlined_call_operand.vmem [shape: f32[2,4,256], index: 3, kind: output, shape index: {}]  }
   0x1 LB: > { %s583_s13 = sadd.s32 4294967295, %s656_s12   ;;  %p587_p0 = scmp.ge.s32.totalorder %s656_s12, 1  ;;  %s656_s12 = sphi %s688_s12, %s13_s12  }
   0x2   : > { %p137_p1 = scmp.lt.s32.totalorder %s656_s12, 3 }
   0x4   : > { %p138_p2 = pnand %p587_p0, %p137_p1 }
   0x5   : > { %p161_p3 = scmp.lt.s32.totalorder (!%p138_p2), %s583_s13, 1  ;;  %v658_v0 = vmov (!%p138_p2), 0.0   ;;  %s659_s18 = smov (!%p138_p2), 1   ;;  %v667_v15 = vmov (!%p138_p2), 0   ;;  %v382_v16 = vld [vmem:[%s770_s2] sm:$0xff] (!%p138_p2)  ;;  %v175_v18 = vlaneseq (!%p138_p2)  ;;  %vm217_vm0 = vcmask (!%p138_p2), 138240  }
   0x6   : > { %141 = sbr.rel (%p138_p2) target bundleno = 446 (0x1be), region = 32  ;;  %171 = vst [vmem:[#allocation2] sm:$0xff] (!%p138_p2), %v658_v0  ;;  %172 = vst [vmem:[#allocation2 + $0x8] sm:$0xff] (!%p138_p2), %v658_v0  ;;  %474 = vmatprep.mubr.f32.mxu0 (!%p138_p2), %v658_v0  ;;  %480 = vmatprep.mubr.f32.mxu1 (!%p138_p2), %v658_v0  ;;  %s660_s19 = smov (!%p138_p2), 17   ;;  %v383_v17 = vld [vmem:[%s770_s2 + $0x8] sm:$0xf] (!%p138_p2) }
   0x7   : > { %s661_s20 = smov (!%p138_p2), 15   ;;  %s662_s21 = smov (!%p138_p2), 16   ;;  %634 = vset.pattern.permute.xlu0 (!%p138_p2), %v667_v15  ;;  %635 = vset.pattern.permute.xlu1 (!%p138_p2), %v667_v15  ;;  %v176_v19 = vand.u32 (!%p138_p2), 127, %v175_v18  ;;  %vm256_vm3 = vcmask (!%p138_p2), 121856   ;;  %vm276_vm5 = vcmask (!%p138_p2), 7168   ;;  %vm238_vm6 = vcmask (!%p138_p2), 130048  }
   0x8   : > { %s663_s22 = smov (!%p138_p2), 127   ;;  %s664_s23 = smov (!%p138_p2), 113   ;;  %vm308_vm8 = vcmask (!%p138_p2), 1039360   ;;  %vm334_vm9 = vcmask (!%p138_p2), 924672   ;;  %vm355_vm10 = vcmask (!%p138_p2), 916480   ;;  %vm373_vm11 = vcmask (!%p138_p2), 908288  }
   0x9   : > { %s665_s24 = smov (!%p138_p2), 112   ;;  %s666_s25 = smov (!%p138_p2), 111   ;;  %v177_v20 = vadd.s32 (!%p138_p2), 128, %v176_v19  ;;  %v182_v23 = vand.u32 (!%p138_p2), 15, %v176_v19  ;;  %vm403_vm12 = vcmask (!%p138_p2), 1043456   ;;  %vm396_vm13 = vcmask (!%p138_p2), 293888  }
   0xb   : > { %v189_v24 = vand.u32 (!%p138_p2), 15, %v177_v20  ;;  %vm710_vm1 = vcmp.ge.s32.totalorder (!%p138_p2), %v182_v23, 1  ;;  %vm734_vm7 = vcmp.le.s32.totalorder (!%p138_p2), %v182_v23, 14 }
   0xd   : > { %s781_s13 = smov (!%p161_p3, %s583_s13), 1  ;;  %v298_v10 = vld [vmem:[#allocation2 + $0xc] sm:$0xf]  ;;  %vm714_vm2 = vcmp.ge.s32.totalorder %v189_v24, 1  ;;  %vm722_vm4 = vcmp.le.s32.totalorder %v189_v24, 14 }
   0xe   : > { %s600_s14 = sshll.u32 %s781_s13, 3  ;;  %v324_v11 = vld [vmem:[#allocation2 + $0xc] sm:$0xf] }
   0xf   : > { %s165_s17 = scalar_lea.vmem %s768_s0, %s600_s14  ;;  %v641_v12 = vld [vmem:[#allocation2 + $0xc] ss:$0 sps:$4 sm:$0xff]   ;;  %s170_s9 = scalar_lea.vmem %s771_s3, %s600_s14 }
  0x10   : > { %v173_v1 = vld [vmem:[%s165_s17] sm:$0xff]  ;;  %v363_v14 = vld [vmem:[#allocation2 + $0xc] sm:$0xf] }
  0x11   : > { %174 = vst [vmem:[#allocation2 + $0x4] sm:$0xff] %v173_v1  ;;  %v301_v2 = vcombine.high %v173_v1, %v173_v1  ;;  %295 = vst [vmem:[#allocation3 + $0x20] sm:$0xf] %v173_v1  ;;  %v347_v13 = vcombine.low %v173_v1, %v173_v1 }
  0x13   : > { %296 = vst [vmem:[#allocation3 + $0x28] sm:$0xf] %v301_v2 }
  0x18   : > { %v266_v3 = vld [vmem:[#allocation2 + $0x8] sm:$0xf]  ;;  %v265_v4 = vld [vmem:[#allocation2] sm:$0xff] }
  0x19   : > { %274 = vrot.lane.b32.xlu0 %v266_v3, %s659_s18  ;;  %270 = vrot.lane.b32.xlu1 %v265_v4, %s659_s18  ;;  %v207_v5 = vld [vmem:[#allocation2 + $0x8] sm:$0xf]  ;;  %v269_v6 = vcombine.high %v265_v4, %v265_v4  ;;  %v230_v9 = vcombine.low %v265_v4, %v265_v4 }
  0x1a   : > { %v246_v7 = vld [vmem:[#allocation2 + $0x8] sm:$0xf] }
  0x1b   : > { %v638_v8 = vld [vmem:[#allocation2 + $0x8] ss:$0 sps:$4 sm:$0xff]  }
  0x1d   : > { %215 = vrot.lane.b32.xlu0 %v207_v5, %s660_s19  ;;  %211 = vrot.lane.b32.xlu1 %v265_v4, %s660_s19 }
  0x21   : > { %254 = vrot.lane.b32.xlu0 %v246_v7, %s661_s20  ;;  %213 = vrot.lane.b32.xlu1 %v269_v6, %s660_s19 }
  0x25   : > { %234 = vrot.lane.b32.xlu0 %v265_v4, %s662_s21  ;;  %252 = vrot.lane.b32.xlu1 %v269_v6, %s661_s20 }
  0x29   : > { %272 = vrot.lane.b32.xlu0 %v269_v6, %s659_s18  ;;  %236 = vrot.lane.b32.xlu1 %v638_v8, %s662_s21 }
  0x2d   : > { %250 = vrot.lane.b32.xlu0 %v265_v4, %s661_s20  ;;  %232 = vrot.lane.b32.xlu1 %v230_v9, %s662_s21 }
  0x31   : > { %304 = vrot.lane.b32.xlu0 %v301_v2, %s663_s22  ;;  %306 = vrot.lane.b32.xlu1 %v298_v10, %s663_s22 }
  0x35   : > { %302 = vrot.lane.b32.xlu0 %v173_v1, %s663_s22  ;;  %330 = vrot.lane.b32.xlu1 %v301_v2, %s664_s23 }
  0x39   : > { %332 = vrot.lane.b32.xlu0 %v324_v11, %s664_s23  ;;  %328 = vrot.lane.b32.xlu1 %v173_v1, %s664_s23 }
  0x3d   : > { %351 = vrot.lane.b32.xlu0 %v173_v1, %s665_s24  ;;  %353 = vrot.lane.b32.xlu1 %v641_v12, %s665_s24 }
  0x41   : > { %349 = vrot.lane.b32.xlu0 %v347_v13, %s665_s24  ;;  %369 = vrot.lane.b32.xlu1 %v301_v2, %s666_s25 }
  0x45   : > { %371 = vrot.lane.b32.xlu0 %v363_v14, %s666_s25  ;;  %367 = vrot.lane.b32.xlu1 %v173_v1, %s666_s25 }
  0x49   : > { %489 = vperm.xlu0 %634, %v382_v16   ;;  %494 = vperm.xlu1 %635, %v383_v17  }
  0x8b   : > { %v275_v21 = vpop.permute.xlu0 %274  ;;  %v271_v22 = vpop.permute.xlu1 %270 }
  0x8f   : > { %v216_v25 = vpop.permute.xlu0 %215  ;;  %v212_v26 = vpop.permute.xlu1 %211 }
  0x93   : > { %v255_v29 = vpop.permute.xlu0 %254  ;;  %v214_v30 = vpop.permute.xlu1 %213 }
  0x94   : > { %v218_v31 = vsel %vm217_vm0, %v212_v26, %v214_v30  ;;  %v219_v32 = vsel %vm217_vm0, %v214_v30, %v216_v25 }
  0x95   : > { %v222_v33 = vsel %vm710_vm1, %v218_v31, 0.0  ;;  %v223_v34 = vsel %vm714_vm2, %v219_v32, 0.0  ;;  %v384_v31 = vld [vmem:[%s769_s1] sm:$0xff] }
  0x96   : > { %224 = vst [vmem:[#allocation3] sm:$0xf] %v222_v33  ;;  %225 = vst [vmem:[#allocation3 + $0x8] sm:$0xf] %v223_v34  ;;  %v385_v34 = vld [vmem:[%s769_s1 + $0x8] sm:$0xf] }
  0x97   : > { %v235_v36 = vpop.permute.xlu0 %234  ;;  %v253_v37 = vpop.permute.xlu1 %252 }
  0x98   : > { %v258_v38 = vsel %vm256_vm3, %v253_v37, %v255_v29 }
  0x99   : > { %v262_v39 = vsel %vm722_vm4, %v258_v38, 0.0 }
  0x9a   : > { %264 = vst [vmem:[#allocation3 + $0x18] sm:$0xf] %v262_v39 }
  0x9b   : > { %v273_v40 = vpop.permute.xlu0 %272  ;;  %v237_v41 = vpop.permute.xlu1 %236 }
  0x9c   : > { %v277_v42 = vsel %vm276_vm5, %v271_v22, %v273_v40  ;;  %v278_v43 = vsel %vm276_vm5, %v273_v40, %v275_v21  ;;  %v240_v44 = vsel %vm238_vm6, %v235_v36, %v237_v41 }
  0x9d   : > { %v281_v45 = vsel %vm710_vm1, %v277_v42, 0.0  ;;  %v282_v46 = vsel %vm714_vm2, %v278_v43, 0.0  ;;  %244 = vst [vmem:[#allocation3 + $0x8] sm:$0xf0] %v240_v44 }
  0x9e   : > { %v285_v47 = vrot.slane %v281_v45, 4  ;;  %v286_v48 = vrot.slane %v282_v46, 4 }
  0x9f   : > { %v251_v50 = vpop.permute.xlu0 %250  ;;  %v233_v51 = vpop.permute.xlu1 %232 }
  0xa0   : > { %289 = vst [vmem:[#allocation3 + $0x10] sm:$0xf0] %v285_v47  ;;  %290 = vst [vmem:[#allocation3 + $0x18] sm:$0xf0] %v286_v48  ;;  %v257_v52 = vsel %vm256_vm3, %v251_v50, %v253_v37  ;;  %v239_v53 = vsel %vm238_vm6, %v233_v51, %v235_v36 }
  0xa1   : > { %v261_v54 = vsel %vm734_vm7, %v257_v52, 0.0  ;;  %243 = vst [vmem:[#allocation3] sm:$0xf0] %v239_v53 }
  0xa2   : > { %263 = vst [vmem:[#allocation3 + $0x10] sm:$0xf] %v261_v54 }
  0xa3   : > { %v305_v55 = vpop.permute.xlu0 %304  ;;  %v307_v56 = vpop.permute.xlu1 %306 }
  0xa4   : > { %v310_v57 = vsel %vm308_vm8, %v305_v55, %v307_v56  ;;  %v387_v62 = vld [vmem:[#allocation3 + $0x8] sm:$0xff] }
  0xa5   : > { %v314_v58 = vsel %vm722_vm4, %v310_v57, 0.0 }
  0xa6   : > { %v318_v59 = vrot.slane %v314_v58, 4 }
  0xa7   : > { %v303_v60 = vpop.permute.xlu0 %302  ;;  %v331_v61 = vpop.permute.xlu1 %330  ;;  %v389_v63 = vld [vmem:[#allocation3 + $0x18] sm:$0xff] }
  0xa8   : > { %322 = vst [vmem:[#allocation3 + $0x28] sm:$0xf0] %v318_v59  ;;  %v309_v0 = vsel %vm308_vm8, %v303_v60, %v305_v55  ;;  %v602_v1 = vpack.c.bf16 %v389_v63, %v387_v62  ;;  %v386_v2 = vld [vmem:[#allocation3] sm:$0xff] }
  0xa9   : > { %v313_v3 = vsel %vm734_vm7, %v309_v0, 0.0  ;;  %v388_v4 = vld [vmem:[#allocation3 + $0x10] sm:$0xff] }
  0xaa   : > { %v317_v5 = vrot.slane %v313_v3, 4  ;;  %603 = vmatprep.subr.bf16.mxu0 %v602_v1  ;;  %610 = vmatprep.subr.bf16.mxu1 %v602_v1  ;;  %v604_v6 = vpack.c.bf16 %v388_v4, %v386_v2 }
  0xab   : > { %v333_v7 = vpop.permute.xlu0 %332  ;;  %v329_v8 = vpop.permute.xlu1 %328 }
  0xac   : > { %321 = vst [vmem:[#allocation3 + $0x20] sm:$0xf0] %v317_v5  ;;  %v336_v9 = vsel %vm334_vm9, %v331_v61, %v333_v7  ;;  %v335_v10 = vsel %vm334_vm9, %v329_v8, %v331_v61  ;;  %605 = vmatpush1.bf16.msra.mxu0 %v604_v6  ;;  %613 = vmatpush1.bf16.msra.mxu1 %v604_v6 }
  0xad   : > { %v340_v11 = vsel %vm714_vm2, %v336_v9, 0.0  ;;  %v339_v12 = vsel %vm710_vm1, %v335_v10, 0.0 }
  0xae   : > { %342 = vst [vmem:[#allocation3 + $0x38] sm:$0xf] %v340_v11  ;;  %341 = vst [vmem:[#allocation3 + $0x30] sm:$0xf] %v339_v12 }
  0xaf   : > { %v352_v13 = vpop.permute.xlu0 %351  ;;  %v354_v14 = vpop.permute.xlu1 %353  ;;  %v391_v23 = vld [vmem:[#allocation3 + $0x28] sm:$0xff] }
  0xb0   : > { %v357_v15 = vsel %vm355_vm10, %v352_v13, %v354_v14 }
  0xb1   : > { %361 = vst [vmem:[#allocation3 + $0x38] sm:$0xf0] %v357_v15 }
  0xb3   : > { %v350_v16 = vpop.permute.xlu0 %349  ;;  %v370_v17 = vpop.permute.xlu1 %369  ;;  %v390_v28 = vld [vmem:[#allocation3 + $0x20] sm:$0xff] }
  0xb4   : > { %v356_v18 = vsel %vm355_vm10, %v350_v16, %v352_v13 }
  0xb5   : > { %360 = vst [vmem:[#allocation3 + $0x30] sm:$0xf0] %v356_v18 }
  0xb7   : > { %v372_v19 = vpop.permute.xlu0 %371  ;;  %v368_v20 = vpop.permute.xlu1 %367 }
  0xb8   : > { %v375_v21 = vsel %vm373_vm11, %v370_v17, %v372_v19  ;;  %v374_v22 = vsel %vm373_vm11, %v368_v20, %v370_v17  ;;  %v393_v24 = vld [vmem:[#allocation3 + $0x38] sm:$0xff] }
  0xb9   : > { %v379_v25 = vsel %vm722_vm4, %v375_v21, 0.0  ;;  %v378_v26 = vsel %vm734_vm7, %v374_v22, 0.0  ;;  %v606_v27 = vpack.c.bf16 %v393_v24, %v391_v23 }
  0xba   : > { %381 = vst [vmem:[#allocation3 + $0x48] sm:$0xf] %v379_v25  ;;  %380 = vst [vmem:[#allocation3 + $0x40] sm:$0xf] %v378_v26 }
  0xbb   : > { %607 = vmatprep.subr.bf16.mxu0 %v606_v27  ;;  %611 = vmatprep.subr.bf16.mxu1 %v606_v27 }
  0xbc   : > { %v392_v29 = vld [vmem:[#allocation3 + $0x30] sm:$0xff] }
  0xbd   : > { %v608_v30 = vpack.c.bf16 %v392_v29, %v390_v28 }
  0xbf   : > { %609 = vmatpush1.bf16.msra.mxu0 %v608_v30  ;;  %614 = vmatpush1.bf16.msra.mxu1 %v608_v30 }
  0xc1   : > { %v395_v32 = vld [vmem:[#allocation3 + $0x48] sm:$0xf]  ;;  %v394_v33 = vld [vmem:[#allocation3 + $0x40] sm:$0xf] }
  0xc2   : > { %592 = vmatprep.subr.msk.mxu0 %vm403_vm12, %v395_v32  ;;  %612 = vmatprep.subr.msk.mxu1 %vm403_vm12, %v395_v32 }
  0xc3   : > { %593 = vmatpush1.msk.msra.mxu0 %vm403_vm12, %v394_v33  ;;  %615 = vmatpush1.msk.msra.mxu1 %vm403_vm12, %v394_v33 }
  0xc4   : > { %594 = vmatmul.mubr.msk.f32.vlgmr.msra.gmra.mrb[0].mxu0 %vm396_vm13, %v384_v31  ;;  %595 = vmatmul.mubr.msk.f32.vlgmr.msra.gmra.mrb[0].mxu1 %vm396_vm13, %v385_v34 }
  0xc8   : > { %v490_v35 = vpop.permute.xlu0 %489  ;;  %v495_v48 = vpop.permute.xlu1 %494 }
 0x197   : > { %v476_v36 = vpop.f32.mrb[0].mxu0  ;;  %v482_v37 = vpop.f32.mrb[0].mxu1 }
 0x198   : > { %v497_v38 = vadd.f32 %v490_v35, %v476_v36  ;;  %v478_v39 = vpop.f32.mrb[1].mxu0  ;;  %v484_v40 = vpop.f32.mrb[1].mxu1  ;;  %v499_v52 = vadd.f32 %v495_v48, %v482_v37 }
 0x199   : > { %v498_v41 = vadd.f32 %v490_v35, %v478_v39  ;;  %v500_v54 = vadd.f32 %v495_v48, %v484_v40 }
 0x19a   : > { %v596_v42 = vmul.f32 -1.442695, %v497_v38 }
 0x19b   : > { %v597_v43 = vmul.f32 -1.442695, %v498_v41 }
 0x19c   : > { %642 = vpow2.f32 %v596_v42 }
 0x19d   : > { %644 = vpow2.f32 %v597_v43 }
 0x1a6   : > { %v643_v44 = vpop.eup %642 }
 0x1a7   : > { %v645_v45 = vpop.eup %644  ;;  %v507_v46 = vadd.f32 1.0, %v643_v44 }
 0x1a8   : > { %v508_v47 = vadd.f32 1.0, %v645_v45 }
 0x1a9   : > { %646 = vrcp.f32 %v507_v46 }
 0x1aa   : > { %648 = vrcp.f32 %v508_v47 }
 0x1b3   : > { %v647_v49 = vpop.eup %646 }
 0x1b4   : > { %v649_v50 = vpop.eup %648  ;;  %v515_v51 = vrot.slane %v647_v49, 4 }
 0x1b5   : > { %v516_v53 = vrot.slane %v649_v50, 4 }
 0x1b6   : > { %v519_v55 = vmul.f32 %v515_v51, %v497_v38 }
 0x1b7   : > { %v520_v56 = vmul.f32 %v516_v53, %v498_v41 }
 0x1b8   : > { %v521_v57 = vadd.f32 %v519_v55, %v499_v52 }
 0x1b9   : > { %v522_v58 = vadd.f32 %v520_v56, %v500_v54 }
 0x1bb   : > { %v525_v59 = vcombine.low %v521_v57, %v522_v58 }
 0x1bd   : > { %527 = vst [vmem:[%s170_s9] sm:$0xff] %v525_v59 }
 0x1be PF: > { %s13_s12 = sadd.s32 1, %s656_s12  }
 0x1bf   : > { %p10_p4 = scmp.ge.s32.totalorder %s13_s12, 4  }
 0x1c1   :  { %12 = sbr.rel (!%p10_p4) target bundleno = 1 (0x1), region = 62 }

</bundles_post_ra>
